<compile_context>
chip_gen: v7x
topology: tpu7x:2x2x1
jax: 0.10.0
libtpu: 0.0.40
codegen_flags: <defaults>
</compile_context>

<pallas_src>
import jax
import jax.numpy as jnp
from jax.experimental import pallas as pl
from jax.experimental.pallas import tpu as pltpu

Z_SHAPE = 1 * 100
IMG_SIZE = 1 * 28 * 28  # 784
H1, H2 = 512, 256
NEG_SLOPE = 0.2

N_PAD = 896  # padded layer-3 / output dim (784 -> 7*128): lane-dense stores


def _leaky_relu(x, neg_slope=NEG_SLOPE):
    # Valid for 0 < neg_slope < 1: max(x, a*x) == leaky_relu(x).
    return jnp.maximum(x, neg_slope * x)


def _round_up(n, m):
    return ((n + m - 1) // m) * m


def _pad_to(a, shape):
    pads = [(0, t - s) for s, t in zip(a.shape, shape)]
    return jnp.pad(a, pads)


def _pick_tb(B):
    """Batch tile size.

    Small B: one tile rounded to a sublane multiple of 8 (latency regime).
    Large B: largest tile in {1024,512,256,128,64} with <~10% padded rows and
    at least 2 grid steps (lets v7x's 2 TensorCores split the batch). If none
    qualifies, minimize padded rows among >=2-step options.
    """
    B8 = _round_up(B, 8)
    if B8 <= 256:
        return B8
    for tb in (1024, 512, 256, 128, 64):
        b_pad = _round_up(B8, tb)
        if b_pad // tb >= 2 and (b_pad - B) * 10 <= B:
            return tb
    return min(
        (tb for tb in (1024, 512, 256, 128, 64) if _round_up(B8, tb) // tb >= 2),
        key=lambda tb: _round_up(B8, tb) - B,
        default=256,
    )


def generator_kernel(x_ref, w1_ref, b1_ref, w2_ref, b2_ref, w3_ref, b3_ref, o_ref):
    # Whole 3-layer MLP per batch tile: 3 bf16 MXU matmuls (f32 accumulate)
    # + f32 VPU bias/leaky-relu + EUP tanh. Weights stay VMEM-resident across
    # the batch grid; only the x tile and output tile stream.
    x = x_ref[...].astype(jnp.bfloat16)  # (TB, 100)

    h = jnp.dot(x, w1_ref[...], preferred_element_type=jnp.float32) + b1_ref[...]
    h = _leaky_relu(h)

    h = jnp.dot(h.astype(jnp.bfloat16), w2_ref[...],
                preferred_element_type=jnp.float32) + b2_ref[...]
    h = _leaky_relu(h)

    h = jnp.dot(h.astype(jnp.bfloat16), w3_ref[...],
                preferred_element_type=jnp.float32) + b3_ref[...]
    h = _leaky_relu(h)

    o_ref[...] = jnp.tanh(h).astype(o_ref.dtype)  # bf16 store (lane-dense, 896 wide)


def prepare_params(params):
    """One-time conversion of f32 [in,out] params to kernel-ready form:
    bf16 weights (MXU-native), f32 biases, layer-3 output padded 784->896."""
    return {
        "w1": params["w1"].astype(jnp.bfloat16),               # (100, 512)
        "b1": params["b1"].astype(jnp.float32),                 # (1, 512)
        "w2": params["w2"].astype(jnp.bfloat16),                # (512, 256)
        "b2": params["b2"].astype(jnp.float32),                 # (1, 256)
        "w3": _pad_to(params["w3"], (H2, N_PAD)).astype(jnp.bfloat16),  # (256, 896)
        "b3": _pad_to(params["b3"], (1, N_PAD)).astype(jnp.float32),    # (1, 896)
    }


def generator_forward(x, kp):
    """x: (B, 100) float32. kp: output of prepare_params. Returns (B, 784) bf16."""
    B = x.shape[0]
    TB = _pick_tb(B)
    B_pad = _round_up(B, TB)

    x_p = _pad_to(x, (B_pad, Z_SHAPE)) if B_pad != B else x

    grid = (B_pad // TB,)
    resident = lambda a: pl.BlockSpec(a.shape, lambda i: (0, 0))

    flops = 2 * B_pad * (Z_SHAPE * H1 + H1 * H2 + H2 * N_PAD)
    bytes_accessed = (
        B_pad * Z_SHAPE * 4                                         # x f32 in
        + (kp["w1"].size + kp["w2"].size + kp["w3"].size) * 2       # bf16 weights
        + (kp["b1"].size + kp["b2"].size + kp["b3"].size) * 4       # f32 biases
        + B_pad * N_PAD * 2                                         # bf16 out
    )

    out = pl.pallas_call(
        generator_kernel,
        out_shape=jax.ShapeDtypeStruct((B_pad, N_PAD), jnp.bfloat16),
        grid_spec=pltpu.PrefetchScalarGridSpec(
            num_scalar_prefetch=0,
            grid=grid,
            in_specs=[
                pl.BlockSpec((TB, Z_SHAPE), lambda i: (i, 0)),  # x: streamed per tile
                resident(kp["w1"]), resident(kp["b1"]),          # weights/biases resident
                resident(kp["w2"]), resident(kp["b2"]),
                resident(kp["w3"]), resident(kp["b3"]),
            ],
            out_specs=pl.BlockSpec((TB, N_PAD), lambda i: (i, 0)),
        ),
        compiler_params=pltpu.CompilerParams(
            dimension_semantics=("parallel",),  # v7x: shard batch tiles across 2 TCs
        ),
        cost_estimate=pl.CostEstimate(
            flops=flops,
            transcendentals=B_pad * N_PAD,
            bytes_accessed=bytes_accessed,
        ),
    )(x_p, kp["w1"], kp["b1"], kp["w2"], kp["b2"], kp["w3"], kp["b3"])

    # Equivalent of out.view(B, 784); under jit this slice fuses into the consumer.
    return out[:B, :IMG_SIZE]


def init_params(key):
    """Deterministic init mirroring nn.Linear's default U(-1/sqrt(fan_in), 1/sqrt(fan_in)).
    Weights stored transposed as [in, out] so the kernel computes x @ W + b."""
    ks = jax.random.split(key, 6)

    def linear(kw, kb, fan_in, fan_out):
        bound = 1.0 / jnp.sqrt(jnp.float32(fan_in))
        w = jax.random.uniform(kw, (fan_in, fan_out), jnp.float32, -bound, bound)
        b = jax.random.uniform(kb, (1, fan_out), jnp.float32, -bound, bound)
        return w, b

    w1, b1 = linear(ks[0], ks[1], Z_SHAPE, H1)
    w2, b2 = linear(ks[2], ks[3], H1, H2)
    w3, b3 = linear(ks[4], ks[5], H2, IMG_SIZE)
    return {"w1": w1, "b1": b1, "w2": w2, "b2": b2, "w3": w3, "b3": b3}


def reference_forward(x, p):
    """Pure-JAX reference with the same bf16-input / f32-accumulate matmul math
    as the kernel (f32 result), so the check isolates kernel mechanics."""
    bf = jnp.bfloat16

    def lin(h, w, b):
        return jnp.dot(h.astype(bf), w.astype(bf),
                       preferred_element_type=jnp.float32) + b

    h = _leaky_relu(lin(x, p["w1"], p["b1"]))
    h = _leaky_relu(lin(h, p["w2"], p["b2"]))
    h = _leaky_relu(lin(h, p["w3"], p["b3"]))
    return jnp.tanh(h)


if __name__ == "__main__":
    key = jax.random.PRNGKey(0)
    k_x, k_p = jax.random.split(key)

    B = 8  # small batch
    x = jax.random.normal(k_x, (B, Z_SHAPE), jnp.float32)
    params = init_params(k_p)
    kparams = prepare_params(params)  # one-time weight conversion (bf16 / padded)

    fwd = jax.jit(generator_forward)
    out = jax.block_until_ready(fwd(x, kparams))
    ref = reference_forward(x, params)

    assert out.shape == (B, IMG_SIZE), out.shape
    assert out.dtype == jnp.bfloat16, out.dtype
    err = float(jnp.max(jnp.abs(out.astype(jnp.float32) - ref)))
    assert jnp.allclose(out.astype(jnp.float32), ref, atol=2e-2, rtol=2e-2), err

    print("KERNEL_OK")
</pallas_src>

<mosaic_0001>
module attributes {stable_mosaic.version = 11 : i64} {
  func.func @generator_kernel(%arg0: i32, %arg1: memref<8x100xf32, #tpu.memory_space<vmem>>, %arg2: memref<100x512xbf16, #tpu.memory_space<vmem>>, %arg3: memref<1x512xf32, #tpu.memory_space<vmem>>, %arg4: memref<512x256xbf16, #tpu.memory_space<vmem>>, %arg5: memref<1x256xf32, #tpu.memory_space<vmem>>, %arg6: memref<256x896xbf16, #tpu.memory_space<vmem>>, %arg7: memref<1x896xf32, #tpu.memory_space<vmem>>, %arg8: memref<8x896xbf16, #tpu.memory_space<vmem>>) attributes {dimension_semantics = [#tpu.dimension_semantics<parallel>], iteration_bounds = array<i64: 1>, scalar_prefetch = 0 : i64, scratch_operands = 0 : i64, tpu.core_type = #tpu.core_type<tc>, window_params = [{transform_indices = @transform_0, window_bounds = array<i64: 8, 100>}, {pipeline_mode = #tpu.pipeline_mode<synchronous>, transform_indices = @transform_1, window_bounds = array<i64: 100, 512>}, {pipeline_mode = #tpu.pipeline_mode<synchronous>, transform_indices = @transform_2, window_bounds = array<i64: 1, 512>}, {pipeline_mode = #tpu.pipeline_mode<synchronous>, transform_indices = @transform_3, window_bounds = array<i64: 512, 256>}, {pipeline_mode = #tpu.pipeline_mode<synchronous>, transform_indices = @transform_4, window_bounds = array<i64: 1, 256>}, {pipeline_mode = #tpu.pipeline_mode<synchronous>, transform_indices = @transform_5, window_bounds = array<i64: 256, 896>}, {pipeline_mode = #tpu.pipeline_mode<synchronous>, transform_indices = @transform_6, window_bounds = array<i64: 1, 896>}, {transform_indices = @transform_7, window_bounds = array<i64: 8, 896>}]} {
    %c0 = arith.constant 0 : index
    %c0_0 = arith.constant 0 : index
    %0 = vector.load %arg1[%c0, %c0_0] : memref<8x100xf32, #tpu.memory_space<vmem>>, vector<8x100xf32>
    %1 = arith.truncf %0 : vector<8x100xf32> to vector<8x100xbf16>
    %c0_1 = arith.constant 0 : index
    %c0_2 = arith.constant 0 : index
    %2 = vector.load %arg2[%c0_1, %c0_2] : memref<100x512xbf16, #tpu.memory_space<vmem>>, vector<100x512xbf16>
    %cst = arith.constant dense<0.000000e+00> : vector<8x512xf32>
    %3 = tpu.matmul %1, %2, %cst {dimension_numbers = #tpu.dot_dimension_numbers<[1], [0], [0], [1], [0, 0, 1, 1], [], []>} : vector<8x100xbf16>, vector<100x512xbf16>, vector<8x512xf32> -> vector<8x512xf32>
    %c0_3 = arith.constant 0 : index
    %c0_4 = arith.constant 0 : index
    %4 = vector.load %arg3[%c0_3, %c0_4] : memref<1x512xf32, #tpu.memory_space<vmem>>, vector<1x512xf32>
    %5 = vector.broadcast %4 : vector<1x512xf32> to vector<8x512xf32>
    %6 = arith.addf %3, %5 : vector<8x512xf32>
    %cst_5 = arith.constant 2.000000e-01 : f32
    %7 = vector.broadcast %cst_5 : f32 to vector<8x512xf32>
    %8 = arith.mulf %7, %6 : vector<8x512xf32>
    %9 = arith.maximumf %6, %8 : vector<8x512xf32>
    %10 = arith.truncf %9 : vector<8x512xf32> to vector<8x512xbf16>
    %c0_6 = arith.constant 0 : index
    %c0_7 = arith.constant 0 : index
    %11 = vector.load %arg4[%c0_6, %c0_7] : memref<512x256xbf16, #tpu.memory_space<vmem>>, vector<512x256xbf16>
    %cst_8 = arith.constant dense<0.000000e+00> : vector<8x256xf32>
    %12 = tpu.matmul %10, %11, %cst_8 {dimension_numbers = #tpu.dot_dimension_numbers<[1], [0], [0], [1], [0, 0, 1, 1], [], []>} : vector<8x512xbf16>, vector<512x256xbf16>, vector<8x256xf32> -> vector<8x256xf32>
    %c0_9 = arith.constant 0 : index
    %c0_10 = arith.constant 0 : index
    %13 = vector.load %arg5[%c0_9, %c0_10] : memref<1x256xf32, #tpu.memory_space<vmem>>, vector<1x256xf32>
    %14 = vector.broadcast %13 : vector<1x256xf32> to vector<8x256xf32>
    %15 = arith.addf %12, %14 : vector<8x256xf32>
    %cst_11 = arith.constant 2.000000e-01 : f32
    %16 = vector.broadcast %cst_11 : f32 to vector<8x256xf32>
    %17 = arith.mulf %16, %15 : vector<8x256xf32>
    %18 = arith.maximumf %15, %17 : vector<8x256xf32>
    %19 = arith.truncf %18 : vector<8x256xf32> to vector<8x256xbf16>
    %c0_12 = arith.constant 0 : index
    %c0_13 = arith.constant 0 : index
    %20 = vector.load %arg6[%c0_12, %c0_13] : memref<256x896xbf16, #tpu.memory_space<vmem>>, vector<256x896xbf16>
    %cst_14 = arith.constant dense<0.000000e+00> : vector<8x896xf32>
    %21 = tpu.matmul %19, %20, %cst_14 {dimension_numbers = #tpu.dot_dimension_numbers<[1], [0], [0], [1], [0, 0, 1, 1], [], []>} : vector<8x256xbf16>, vector<256x896xbf16>, vector<8x896xf32> -> vector<8x896xf32>
    %c0_15 = arith.constant 0 : index
    %c0_16 = arith.constant 0 : index
    %22 = vector.load %arg7[%c0_15, %c0_16] : memref<1x896xf32, #tpu.memory_space<vmem>>, vector<1x896xf32>
    %23 = vector.broadcast %22 : vector<1x896xf32> to vector<8x896xf32>
    %24 = arith.addf %21, %23 : vector<8x896xf32>
    %cst_17 = arith.constant 2.000000e-01 : f32
    %25 = vector.broadcast %cst_17 : f32 to vector<8x896xf32>
    %26 = arith.mulf %25, %24 : vector<8x896xf32>
    %27 = arith.maximumf %24, %26 : vector<8x896xf32>
    %28 = math.tanh %27 : vector<8x896xf32>
    %29 = arith.truncf %28 : vector<8x896xf32> to vector<8x896xbf16>
    %c0_18 = arith.constant 0 : index
    %c0_19 = arith.constant 0 : index
    %30 = vector.load %arg8[%c0_18, %c0_19] : memref<8x896xbf16, #tpu.memory_space<vmem>>, vector<8x896xbf16>
    tpu.vector_store %arg8[%c0_18, %c0_19], %29 {strides = array<i32>} : memref<8x896xbf16, #tpu.memory_space<vmem>>, vector<8x896xbf16>,
    return
  }
  func.func @transform_0(%arg0: i32) -> (i32, i32) {
    %c0_i32 = arith.constant 0 : i32
    %c0_i32_0 = arith.constant 0 : i32
    return %arg0, %c0_i32 : i32, i32
  }
  func.func @transform_1(%arg0: i32) -> (i32, i32) {
    %c0_i32 = arith.constant 0 : i32
    %c0_i32_0 = arith.constant 0 : i32
    %c0_i32_1 = arith.constant 0 : i32
    return %c0_i32, %c0_i32_0 : i32, i32
  }
  func.func @transform_2(%arg0: i32) -> (i32, i32) {
    %c0_i32 = arith.constant 0 : i32
    %c0_i32_0 = arith.constant 0 : i32
    %c0_i32_1 = arith.constant 0 : i32
    return %c0_i32, %c0_i32_0 : i32, i32
  }
  func.func @transform_3(%arg0: i32) -> (i32, i32) {
    %c0_i32 = arith.constant 0 : i32
    %c0_i32_0 = arith.constant 0 : i32
    %c0_i32_1 = arith.constant 0 : i32
    return %c0_i32, %c0_i32_0 : i32, i32
  }
  func.func @transform_4(%arg0: i32) -> (i32, i32) {
    %c0_i32 = arith.constant 0 : i32
    %c0_i32_0 = arith.constant 0 : i32
    %c0_i32_1 = arith.constant 0 : i32
    return %c0_i32, %c0_i32_0 : i32, i32
  }
  func.func @transform_5(%arg0: i32) -> (i32, i32) {
    %c0_i32 = arith.constant 0 : i32
    %c0_i32_0 = arith.constant 0 : i32
    %c0_i32_1 = arith.constant 0 : i32
    return %c0_i32, %c0_i32_0 : i32, i32
  }
  func.func @transform_6(%arg0: i32) -> (i32, i32) {
    %c0_i32 = arith.constant 0 : i32
    %c0_i32_0 = arith.constant 0 : i32
    %c0_i32_1 = arith.constant 0 : i32
    return %c0_i32, %c0_i32_0 : i32, i32
  }
  func.func @transform_7(%arg0: i32) -> (i32, i32) {
    %c0_i32 = arith.constant 0 : i32
    %c0_i32_0 = arith.constant 0 : i32
    return %arg0, %c0_i32 : i32, i32
  }
}

</mosaic_0001>

<bundles_post_ra>
// kernel: generator_forward.1
= control target key start
LH: loop header
LB: loop body
LE: loop exit
PB: predicated region body
PF: predicated region fallthrough
CT: control target
= control target key end

     0   :  { %12 = vsyncpa [#allocation3], 0  ;;  %s2735_s0 = inlined_call_operand.hbm [shape: f32[8,100], index: 0, kind: input, shape index: {}]   ;;  %s2736_s1 = inlined_call_operand.hbm [shape: bf16[100,512], index: 1, kind: input, shape index: {}]   ;;  %s2737_s2 = inlined_call_operand.hbm [shape: f32[1,512], index: 2, kind: input, shape index: {}]   ;;  %s2738_s3 = inlined_call_operand.hbm [shape: bf16[512,256], index: 3, kind: input, shape index: {}]   ;;  %s2739_s4 = inlined_call_operand.vmem [shape: f32[1,256], index: 4, kind: input, shape index: {}]   ;;  %s2740_s5 = inlined_call_operand.hbm [shape: bf16[256,896], index: 5, kind: input, shape index: {}]   ;;  %s2741_s6 = inlined_call_operand.vmem [shape: f32[1,896], index: 6, kind: input, shape index: {}]   ;;  %s2742_s7 = inlined_call_operand.hbm [shape: bf16[8,896], index: 7, kind: output, shape index: {}]  }
   0x1   :  { %13 = vsyncpa [#allocation6], 0 }
   0x2   :  { %14 = vsyncpa [#allocation9], 0 }
   0x3   :  { %15 = vsyncpa [#allocation4], 0  ;;  %s2549_s24 = smov [#allocation5]   ;;  %s2409_s28 = scalar_lea.hbm %s2736_s1, 3328 }
   0x4   :  { %s31_s25 = sshll.u32 %s2549_s24, 4  ;;  %p2410_p0 = scmp.ne.s32.totalorder %s2736_s1, %s2409_s28  ;;  %s32_s25 = int_to_ptr.vmem [resolvable:$true] %s31_s25 }
   0x5   :  { %p2413_p1 = scmp.lt.u32.totalorder %s2409_s28, %s2736_s1 }
   0x7   :  { %p2415_p2 = pnand %p2413_p1, %p2410_p0 }
   0x9   :  { %2418 = shalt.err (!%p2415_p2)
}
   0xa   :  { %s2419_s10 = scalar_lea.vmem %s32_s25, 3328  ;;  %p2424_p4 = scmp.lt.s32.totalorder %s32_s25, %s32_s25 }
   0xb   :  { %p2420_p3 = scmp.ne.s32.totalorder %s32_s25, %s2419_s10  ;;  %p2425_p5 = scmp.lt.s32.totalorder %s2419_s10, %s2419_s10 }
   0xd   :  { %p2426_p6 = por %p2425_p5, %p2424_p4 }
   0xf   :  { %p2427_p7 = pnand %p2426_p6, %p2420_p3 }
  0x11   :  { %2430 = shalt.err (!%p2427_p7)
}
  0x12   :  { %s2550_s11 = smov 256   ;;  %s2551_s12 = smov 16  }
  0x13   :  { %37 = dma.hbm_to_vmem [thread:$0]  %s2736_s1, 3328, %s32_s25, [#allocation6], %s2550_s11, %s2550_s11, %s2551_s12  }
  0x14   :  { %s2552_s15 = smov [#allocation8]   ;;  %s2431_s19 = scalar_lea.hbm %s2738_s3, 8192 }
  0x15   :  { %s53_s16 = sshll.u32 %s2552_s15, 4  ;;  %p2432_p8 = scmp.ne.s32.totalorder %s2738_s3, %s2431_s19  ;;  %s54_s16 = int_to_ptr.vmem [resolvable:$true] %s53_s16 }
  0x16   :  { %p2435_p9 = scmp.lt.u32.totalorder %s2431_s19, %s2738_s3 }
  0x18   :  { %p2437_p10 = pnand %p2435_p9, %p2432_p8 }
  0x1a   :  { %2440 = shalt.err (!%p2437_p10)
}
  0x1b   :  { %s2441_s24 = scalar_lea.vmem %s54_s16, 8192  ;;  %p2446_p12 = scmp.lt.s32.totalorder %s54_s16, %s54_s16 }
  0x1c   :  { %p2442_p11 = scmp.ne.s32.totalorder %s54_s16, %s2441_s24  ;;  %p2447_p13 = scmp.lt.s32.totalorder %s2441_s24, %s2441_s24 }
  0x1e   :  { %p2448_p0 = por %p2447_p13, %p2446_p12 }
  0x20   :  { %p2449_p1 = pnand %p2448_p0, %p2442_p11 }
  0x22   :  { %2452 = shalt.err (!%p2449_p1)
}
  0x23   :  { %s2553_s1 = smov 128   ;;  %s2554_s25 = smov 8  }
  0x24   :  { %59 = dma.hbm_to_vmem [thread:$0]  %s2738_s3, 8192, %s54_s16, [#allocation9], %s2553_s1, %s2553_s1, %s2554_s25  }
  0x25   :  { %s2555_s28 = smov [#allocation2]   ;;  %s2556_s30 = smov [#allocation7]  }
  0x26   :  { %s22_s29 = sshll.u32 %s2555_s28, 4  ;;  %s44_s8 = sshll.u32 %s2556_s30, 4  ;;  %s23_s29 = int_to_ptr.vmem [resolvable:$true] %s22_s29  ;;  %s45_s8 = int_to_ptr.vmem [resolvable:$true] %s44_s8 }
  0x27   :  { %s2453_s11 = scalar_lea.hbm %s2735_s0, 128 }
  0x28   :  { %p2454_p2 = scmp.ne.s32.totalorder %s2735_s0, %s2453_s11  ;;  %p2457_p3 = scmp.lt.u32.totalorder %s2453_s11, %s2735_s0 }
  0x2a   :  { %p2459_p4 = pnand %p2457_p3, %p2454_p2 }
  0x2c   :  { %2462 = shalt.err (!%p2459_p4)
}
  0x2d   :  { %s2463_s3 = scalar_lea.vmem %s23_s29, 128  ;;  %p2468_p6 = scmp.lt.s32.totalorder %s23_s29, %s23_s29 }
  0x2e   :  { %p2464_p5 = scmp.ne.s32.totalorder %s23_s29, %s2463_s3  ;;  %p2469_p7 = scmp.lt.s32.totalorder %s2463_s3, %s2463_s3 }
  0x30   :  { %p2470_p8 = por %p2469_p7, %p2468_p6 }
  0x32   :  { %p2471_p9 = pnand %p2470_p8, %p2464_p5 }
  0x34   :  { %2474 = shalt.err (!%p2471_p9)
}
  0x35   :  { %25 = dma.hbm_to_vmem [thread:$0]  %s2735_s0, 128, %s23_s29, [#allocation3]  }
  0x36   :  { %s2475_s20 = scalar_lea.hbm %s2737_s2, 64 }
  0x37   :  { %p2476_p10 = scmp.ne.s32.totalorder %s2737_s2, %s2475_s20  ;;  %p2479_p11 = scmp.lt.u32.totalorder %s2475_s20, %s2737_s2 }
  0x39   :  { %p2481_p12 = pnand %p2479_p11, %p2476_p10 }
  0x3b   :  { %2484 = shalt.err (!%p2481_p12)
}
  0x3c   :  { %s2485_s1 = scalar_lea.vmem %s45_s8, 64  ;;  %p2490_p0 = scmp.lt.s32.totalorder %s45_s8, %s45_s8 }
  0x3d   :  { %p2486_p13 = scmp.ne.s32.totalorder %s45_s8, %s2485_s1  ;;  %p2491_p1 = scmp.lt.s32.totalorder %s2485_s1, %s2485_s1 }
  0x3f   :  { %p2492_p2 = por %p2491_p1, %p2490_p0 }
  0x41   :  { %p2493_p3 = pnand %p2492_p2, %p2486_p13 }
  0x43   :  { %2496 = shalt.err (!%p2493_p3)
}
  0x44   :  { %47 = dma.hbm_to_vmem [thread:$0]  %s2737_s2, 64, %s45_s8, [#allocation6]  }
  0x45   :  { %s2557_s26 = smov [#allocation10]   ;;  %s2497_s30 = scalar_lea.hbm %s2740_s5, 14336 }
  0x46   :  { %s67_s27 = sshll.u32 %s2557_s26, 4  ;;  %p2498_p4 = scmp.ne.s32.totalorder %s2740_s5, %s2497_s30  ;;  %s68_s27 = int_to_ptr.vmem [resolvable:$true] %s67_s27 }
  0x47   :  { %p2501_p5 = scmp.lt.u32.totalorder %s2497_s30, %s2740_s5 }
  0x49   :  { %p2503_p6 = pnand %p2501_p5, %p2498_p4 }
  0x4b   :  { %2506 = shalt.err (!%p2503_p6)
}
  0x4c   :  { %s2507_s13 = scalar_lea.vmem %s68_s27, 14336  ;;  %p2512_p8 = scmp.lt.s32.totalorder %s68_s27, %s68_s27 }
  0x4d   :  { %p2508_p7 = scmp.ne.s32.totalorder %s68_s27, %s2507_s13  ;;  %p2513_p9 = scmp.lt.s32.totalorder %s2507_s13, %s2507_s13 }
  0x4f   :  { %p2514_p10 = por %p2513_p9, %p2512_p8 }
  0x51   :  { %p2515_p11 = pnand %p2514_p10, %p2508_p7 }
  0x53   :  { %2518 = shalt.err (!%p2515_p11)
}
  0x54   :  { %s2558_s2 = smov 448   ;;  %s2559_s8 = smov 28  }
  0x55   :  { %73 = dma.hbm_to_vmem [thread:$0]  %s2740_s5, 14336, %s68_s27, [#allocation9], %s2558_s2, %s2558_s2, %s2559_s8  }
  0x56   :  { %2541 = dma.done.wait [#allocation3], 128  }
  0x57   :  { %2542 = vsyncadd [#allocation3], 4294967168 }
  0x58   :  { %2543 = dma.done.wait [#allocation6], 3392  }
  0x59   :  { %2544 = vsyncadd [#allocation6], 4294963904 }
  0x5a   :  { %2545 = dma.done.wait [#allocation9], 22528  }
  0x5b   :  { %2546 = vsyncadd [#allocation9], 4294944768  ;;  %v2560_v0 = vmov 0   ;;  %v2099_v1 = vld [vmem:[#allocation5 + $0x4] ss:$16 sps:$4 sm:$0xff]   ;;  %vm276_vm0 = vcmask 1041408  }
  0x5c   :  { %321 = vmatprep.mubr.bf16.mxu1 %v2560_v0  ;;  %v2101_v2 = vld [vmem:[#allocation5] ss:$16 sps:$4 sm:$0xff]   ;;  %289 = vmatprep.subr.bf16.mxu1 %v2099_v1  ;;  %v2102_v3 = vld [vmem:[#allocation5 + $0x24] ss:$16 sps:$4 sm:$0xff]   ;;  %v92_v21 = vld [vmem:[#allocation2] sm:$0xff]  ;;  %vm272_vm1 = vcmask 818176  }
  0x5d   :  { %290 = vmatpush1.bf16.msra.mxu1 %v2101_v2  ;;  %v2104_v4 = vld [vmem:[#allocation5 + $0x20] ss:$16 sps:$4 sm:$0xff]   ;;  %v2105_v5 = vld [vmem:[#allocation5 + $0x44] ss:$16 sps:$4 sm:$0xff]   ;;  %v2121_v23 = vld [vmem:[#allocation5 + $0xc] ss:$16 sps:$4 sm:$0xff]   ;;  %v2664_v26 = vpack.c.bf16 %v92_v21, %v92_v21 }
  0x5e   :  { %291 = vmatprep.subr.bf16.mxu1 %v2102_v3  ;;  %v2107_v6 = vld [vmem:[#allocation5 + $0x40] ss:$16 sps:$4 sm:$0xff]   ;;  %v2108_v7 = vld [vmem:[#allocation5 + $0x64] ss:$16 sps:$4 sm:$0xff]   ;;  %v2119_v27 = vld [vmem:[#allocation5 + $0x8] ss:$16 sps:$4 sm:$0xff]  }
  0x5f   :  { %v2110_v8 = vld [vmem:[#allocation5 + $0x60] ss:$16 sps:$4 sm:$0xff]   ;;  %v2111_v9 = vld [vmem:[#allocation5 + $0x84] ss:$16 sps:$4 sm:$0xff]   ;;  %v2124_v28 = vld [vmem:[#allocation5 + $0x2c] ss:$16 sps:$4 sm:$0xff]  }
  0x60   :  { %v2113_v10 = vld [vmem:[#allocation5 + $0x80] ss:$16 sps:$4 sm:$0xff]   ;;  %v2114_v11 = vld [vmem:[#allocation5 + $0xa4] ss:$16 sps:$4 sm:$0xff]   ;;  %v2122_v31 = vld [vmem:[#allocation5 + $0x28] ss:$16 sps:$4 sm:$0xff]  }
  0x61   :  { %292 = vmatpush1.bf16.msra.mxu1 %v2104_v4  ;;  %v118_v12 = vld [vmem:[#allocation5 + $0xc0] sm:$0x33]  ;;  %v2141_v14 = vld [vmem:[#allocation8] ss:$8 sps:$4 sm:$0xff]   ;;  %v2142_v16 = vld [vmem:[#allocation8 + $0x14] ss:$8 sps:$4 sm:$0xff]  }
  0x62   :  { %293 = vmatprep.subr.bf16.mxu1 %v2105_v5  ;;  %v2139_v13 = vld [vmem:[#allocation8 + $0x4] ss:$8 sps:$4 sm:$0xff]   ;;  %v1867_v17 = vcombine.high %v118_v12, %v118_v12  ;;  %v1866_v18 = vcombine.low %v118_v12, %v118_v12  ;;  %v2144_v19 = vld [vmem:[#allocation8 + $0x10] ss:$8 sps:$4 sm:$0xff]   ;;  %v2147_v24 = vld [vmem:[#allocation8 + $0x20] ss:$8 sps:$4 sm:$0xff]  }
  0x63   :  { %v2116_v15 = vld [vmem:[#allocation5 + $0xa0] ss:$16 sps:$4 sm:$0xff]   ;;  %779 = vmatprep.subr.bf16.mxu0 %v2139_v13  ;;  %v2150_v29 = vld [vmem:[#allocation8 + $0x30] ss:$8 sps:$4 sm:$0xff]   ;;  %v2153_v33 = vld [vmem:[#allocation8 + $0x40] ss:$8 sps:$4 sm:$0xff]  }
  0x64   :  { %780 = vmatpush1.bf16.msra.mxu0 %v2141_v14  ;;  %v2145_v20 = vld [vmem:[#allocation8 + $0x24] ss:$8 sps:$4 sm:$0xff]   ;;  %v278_v22 = vsel %vm276_vm0, %v1866_v18, 0  ;;  %v2148_v25 = vld [vmem:[#allocation8 + $0x34] ss:$8 sps:$4 sm:$0xff]  }
  0x65   :  { %294 = vmatpush1.bf16.msra.mxu1 %v2107_v6  ;;  %781 = vmatprep.subr.bf16.mxu0 %v2142_v16  ;;  %v2151_v30 = vld [vmem:[#allocation8 + $0x44] ss:$8 sps:$4 sm:$0xff]   ;;  %v2127_v32 = vld [vmem:[#allocation5 + $0x4c] ss:$16 sps:$4 sm:$0xff]   ;;  %v2154_v34 = vld [vmem:[#allocation8 + $0x54] ss:$8 sps:$4 sm:$0xff]  }
  0x66   :  { %295 = vmatprep.subr.bf16.mxu1 %v2108_v7  ;;  %v2125_v35 = vld [vmem:[#allocation5 + $0x48] ss:$16 sps:$4 sm:$0xff]   ;;  %v2130_v36 = vld [vmem:[#allocation5 + $0x6c] ss:$16 sps:$4 sm:$0xff]   ;;  %v2235_v4 = vld [vmem:[#allocation10] ss:$28 sps:$4 sm:$0xff]  }
  0x67   :  { %v2156_v37 = vld [vmem:[#allocation8 + $0x50] ss:$8 sps:$4 sm:$0xff]   ;;  %v2157_v38 = vld [vmem:[#allocation8 + $0x64] ss:$8 sps:$4 sm:$0xff]   ;;  %v2159_v41 = vld [vmem:[#allocation8 + $0x60] ss:$8 sps:$4 sm:$0xff]  }
  0x68   :  { %782 = vmatpush1.bf16.msra.mxu0 %v2144_v19  ;;  %v2128_v39 = vld [vmem:[#allocation5 + $0x68] ss:$16 sps:$4 sm:$0xff]   ;;  %v2133_v40 = vld [vmem:[#allocation5 + $0x8c] ss:$16 sps:$4 sm:$0xff]   ;;  %v2259_v13 = vld [vmem:[#allocation10 + $0xe0] ss:$28 sps:$4 sm:$0xff]  }
  0x69   :  { %296 = vmatpush1.bf16.msra.mxu1 %v2110_v8  ;;  %783 = vmatprep.subr.bf16.mxu0 %v2145_v20  ;;  %v2160_v42 = vld [vmem:[#allocation8 + $0x74] ss:$8 sps:$4 sm:$0xff]   ;;  %v2136_v44 = vld [vmem:[#allocation5 + $0xac] ss:$16 sps:$4 sm:$0xff]   ;;  %v2163_v47 = vld [vmem:[#allocation8 + $0x84] ss:$8 sps:$4 sm:$0xff]  }
  0x6a   :  { %297 = vmatprep.subr.bf16.mxu1 %v2111_v9  ;;  %v2131_v43 = vld [vmem:[#allocation5 + $0x88] ss:$16 sps:$4 sm:$0xff]   ;;  %v2162_v45 = vld [vmem:[#allocation8 + $0x70] ss:$8 sps:$4 sm:$0xff]   ;;  %v2165_v49 = vld [vmem:[#allocation8 + $0x80] ss:$8 sps:$4 sm:$0xff]  }
  0x6b   :  { %v119_v46 = vld [vmem:[#allocation5 + $0xc8] sm:$0x33]  ;;  %v2169_v54 = vld [vmem:[#allocation8 + $0xa4] ss:$8 sps:$4 sm:$0xff]   ;;  %v2171_v56 = vld [vmem:[#allocation8 + $0xa0] ss:$8 sps:$4 sm:$0xff]  }
  0x6c   :  { %784 = vmatpush1.bf16.msra.mxu0 %v2147_v24  ;;  %v2134_v48 = vld [vmem:[#allocation5 + $0xa8] ss:$16 sps:$4 sm:$0xff]   ;;  %v1869_v51 = vcombine.high %v119_v46, %v119_v46  ;;  %v1868_v52 = vcombine.low %v119_v46, %v119_v46  ;;  %v2168_v53 = vld [vmem:[#allocation8 + $0x90] ss:$8 sps:$4 sm:$0xff]   ;;  %v2177_v60 = vld [vmem:[#allocation8 + $0xc0] ss:$8 sps:$4 sm:$0xff]  }
  0x6d   :  { %298 = vmatpush1.bf16.msra.mxu1 %v2113_v10  ;;  %785 = vmatprep.subr.bf16.mxu0 %v2148_v25  ;;  %v2166_v50 = vld [vmem:[#allocation8 + $0x94] ss:$8 sps:$4 sm:$0xff]   ;;  %v2174_v58 = vld [vmem:[#allocation8 + $0xb0] ss:$8 sps:$4 sm:$0xff]   ;;  %v2175_v59 = vld [vmem:[#allocation8 + $0xc4] ss:$8 sps:$4 sm:$0xff]   ;;  %v122_v25 = vlaneseq }
  0x6e   :  { %299 = vmatprep.subr.bf16.mxu1 %v2114_v11  ;;  %v284_v55 = vsel %vm276_vm0, %v1868_v52, 0  ;;  %v2172_v57 = vld [vmem:[#allocation8 + $0xb4] ss:$8 sps:$4 sm:$0xff]   ;;  %v2180_v62 = vld [vmem:[#allocation8 + $0xd0] ss:$8 sps:$4 sm:$0xff]  }
  0x6f   :  { %v2178_v61 = vld [vmem:[#allocation8 + $0xd4] ss:$8 sps:$4 sm:$0xff]   ;;  %v2181_v63 = vld [vmem:[#allocation8 + $0xe4] ss:$8 sps:$4 sm:$0xff]   ;;  %v2186_v2 = vld [vmem:[#allocation8 + $0xf0] ss:$8 sps:$4 sm:$0xff]  }
  0x70   :  { %786 = vmatpush1.bf16.msra.mxu0 %v2150_v29  ;;  %v2184_v1 = vld [vmem:[#allocation8 + $0xf4] ss:$8 sps:$4 sm:$0xff]   ;;  %v2189_v3 = vld [vmem:[#allocation8 + $0x104] ss:$8 sps:$4 sm:$0xff]  }
  0x71   :  { %300 = vmatpush1.bf16.msra.mxu1 %v2116_v15  ;;  %787 = vmatprep.subr.bf16.mxu0 %v2151_v30  ;;  %v2237_v5 = vld [vmem:[#allocation10 + $0x4] ss:$28 sps:$4 sm:$0xff]   ;;  %v2243_v6 = vld [vmem:[#allocation10 + $0x3c] ss:$28 sps:$4 sm:$0xff]   ;;  %v2249_v8 = vld [vmem:[#allocation10 + $0x74] ss:$28 sps:$4 sm:$0xff]  }
  0x72   :  { %1870 = vmatprep.subr.msk.bf16.mxu1 %vm276_vm0, %v1867_v17  ;;  %v2241_v7 = vld [vmem:[#allocation10 + $0x38] ss:$28 sps:$4 sm:$0xff]   ;;  %v2247_v9 = vld [vmem:[#allocation10 + $0x70] ss:$28 sps:$4 sm:$0xff]   ;;  %v2253_v11 = vld [vmem:[#allocation10 + $0xa8] ss:$28 sps:$4 sm:$0xff]  }
  0x73   :  { %v2255_v10 = vld [vmem:[#allocation10 + $0xac] ss:$28 sps:$4 sm:$0xff]   ;;  %v2261_v12 = vld [vmem:[#allocation10 + $0xe4] ss:$28 sps:$4 sm:$0xff]   ;;  %v2267_v14 = vld [vmem:[#allocation10 + $0x11c] ss:$28 sps:$4 sm:$0xff]  }
  0x74   :  { %788 = vmatpush1.bf16.msra.mxu0 %v2153_v33  ;;  %v2265_v15 = vld [vmem:[#allocation10 + $0x118] ss:$28 sps:$4 sm:$0xff]   ;;  %v2271_v17 = vld [vmem:[#allocation10 + $0x150] ss:$28 sps:$4 sm:$0xff]   ;;  %v2277_v19 = vld [vmem:[#allocation10 + $0x188] ss:$28 sps:$4 sm:$0xff]  }
  0x75   :  { %302 = vmatpush1.bf16.msra.mxu1 %v278_v22  ;;  %789 = vmatprep.subr.bf16.mxu0 %v2154_v34  ;;  %v2273_v16 = vld [vmem:[#allocation10 + $0x154] ss:$28 sps:$4 sm:$0xff]   ;;  %v2279_v18 = vld [vmem:[#allocation10 + $0x18c] ss:$28 sps:$4 sm:$0xff]   ;;  %v2285_v20 = vld [vmem:[#allocation10 + $0x1c4] ss:$28 sps:$4 sm:$0xff]  }
  0x76   :  { %330 = vmatprep.subr.bf16.mxu1 %v2121_v23  ;;  %v2283_v21 = vld [vmem:[#allocation10 + $0x1c0] ss:$28 sps:$4 sm:$0xff]   ;;  %v2289_v23 = vld [vmem:[#allocation10 + $0x1f8] ss:$28 sps:$4 sm:$0xff]   ;;  %v2301_v29 = vld [vmem:[#allocation10 + $0x268] ss:$28 sps:$4 sm:$0xff]  }
  0x77   :  { %v2291_v22 = vld [vmem:[#allocation10 + $0x1fc] ss:$28 sps:$4 sm:$0xff]   ;;  %v2297_v24 = vld [vmem:[#allocation10 + $0x234] ss:$28 sps:$4 sm:$0xff]   ;;  %v2309_v30 = vld [vmem:[#allocation10 + $0x2a4] ss:$28 sps:$4 sm:$0xff]  }
  0x78   :  { %1871 = vmatmul.mubr.msk.bf16.vlgmr.msra.gmra.mrb[0].mxu1 %vm272_vm1, %v2664_v26  ;;  %790 = vmatpush1.bf16.msra.mxu0 %v2156_v37  ;;  %v2307_v34 = vld [vmem:[#allocation10 + $0x2a0] ss:$28 sps:$4 sm:$0xff]  }
  0x79   :  { %331 = vmatpush1.bf16.msra.mxu1 %v2119_v27  ;;  %362 = vmatprep.mubr.bf16.mxu1 %v2560_v0  ;;  %v2183_v0 = vld [vmem:[#allocation8 + $0xe0] ss:$8 sps:$4 sm:$0xff]   ;;  %v2192_v52 = vld [vmem:[#allocation8 + $0x114] ss:$8 sps:$4 sm:$0xff]  }
  0x7a   :  { %332 = vmatprep.subr.bf16.mxu1 %v2124_v28  ;;  %791 = vmatprep.subr.bf16.mxu0 %v2157_v38  ;;  %v2303_v27 = vld [vmem:[#allocation10 + $0x26c] ss:$28 sps:$4 sm:$0xff]   ;;  %v2672_v28 = vshrl.u32 %v122_v25, 7  ;;  %v2313_v38 = vld [vmem:[#allocation10 + $0x2d8] ss:$28 sps:$4 sm:$0xff]  }
  0x7b   :  { %v2226_v25 = vld [vmem:[#allocation8 + $0x1d0] ss:$8 sps:$4 sm:$0xff]  }
  0x7c   :  { %792 = vmatpush1.bf16.msra.mxu0 %v2159_v41  ;;  %v2680_v33 = vsub.s32 1, %v2672_v28 }
  0x7d   :  { %333 = vmatpush1.bf16.msra.mxu1 %v2122_v31  ;;  %793 = vmatprep.subr.bf16.mxu0 %v2160_v42  ;;  %v2675_v31 = vsub.s32 0, %v2672_v28 }
  0x7e   :  { %334 = vmatprep.subr.bf16.mxu1 %v2127_v32  ;;  %v2677_v32 = vld [vmem:[#allocation7] sm:$0xf] }
  0x7f   :  { %v129_v37 = vrot.slane %v2677_v32, %v2680_v33 }
  0x80   :  { %794 = vmatpush1.bf16.msra.mxu0 %v2162_v45 }
  0x81   :  { %335 = vmatpush1.bf16.msra.mxu1 %v2125_v35  ;;  %795 = vmatprep.subr.bf16.mxu0 %v2163_v47  ;;  %v2315_v35 = vld [vmem:[#allocation10 + $0x2dc] ss:$28 sps:$4 sm:$0xff]  }
  0x82   :  { %336 = vmatprep.subr.bf16.mxu1 %v2130_v36  ;;  %v125_v36 = vrot.slane %v2677_v32, %v2675_v31 }
  0x84   :  { %796 = vmatpush1.bf16.msra.mxu0 %v2165_v49 }
  0x85   :  { %337 = vmatpush1.bf16.msra.mxu1 %v2128_v39  ;;  %797 = vmatprep.subr.bf16.mxu0 %v2166_v50  ;;  %v2187_v50 = vld [vmem:[#allocation8 + $0x100] ss:$8 sps:$4 sm:$0xff]  }
  0x86   :  { %338 = vmatprep.subr.bf16.mxu1 %v2133_v40 }
  0x88   :  { %798 = vmatpush1.bf16.msra.mxu0 %v2168_v53  ;;  %v2190_v53 = vld [vmem:[#allocation8 + $0x110] ss:$8 sps:$4 sm:$0xff]  }
  0x89   :  { %339 = vmatpush1.bf16.msra.mxu1 %v2131_v43  ;;  %799 = vmatprep.subr.bf16.mxu0 %v2169_v54  ;;  %v2195_v54 = vld [vmem:[#allocation8 + $0x124] ss:$8 sps:$4 sm:$0xff]  }
  0x8a   :  { %340 = vmatprep.subr.bf16.mxu1 %v2136_v44 }
  0x8c   :  { %800 = vmatpush1.bf16.msra.mxu0 %v2171_v56  ;;  %v2198_v56 = vld [vmem:[#allocation8 + $0x134] ss:$8 sps:$4 sm:$0xff]  }
  0x8d   :  { %341 = vmatpush1.bf16.msra.mxu1 %v2134_v48  ;;  %801 = vmatprep.subr.bf16.mxu0 %v2172_v57  ;;  %v2196_v57 = vld [vmem:[#allocation8 + $0x130] ss:$8 sps:$4 sm:$0xff]  }
  0x8e   :  { %1872 = vmatprep.subr.msk.bf16.mxu1 %vm276_vm0, %v1869_v51 }
  0x90   :  { %802 = vmatpush1.bf16.msra.mxu0 %v2174_v58  ;;  %v2201_v58 = vld [vmem:[#allocation8 + $0x144] ss:$8 sps:$4 sm:$0xff]  }
  0x91   :  { %343 = vmatpush1.bf16.msra.mxu1 %v284_v55  ;;  %803 = vmatprep.subr.bf16.mxu0 %v2175_v59  ;;  %v2193_v55 = vld [vmem:[#allocation8 + $0x120] ss:$8 sps:$4 sm:$0xff]   ;;  %v136_v59 = vsub.s32 3, %v2672_v28 }
  0x92   :  { %1608 = vmatprep.subr.bf16.mxu1 %v2237_v5 }
  0x94   :  { %1873 = vmatmul.mubr.msk.bf16.vlgmr.msra.gmra.mrb[4].mxu1 %vm272_vm1, %v2664_v26  ;;  %804 = vmatpush1.bf16.msra.mxu0 %v2177_v60  ;;  %v2295_v26 = vld [vmem:[#allocation10 + $0x230] ss:$28 sps:$4 sm:$0xff]   ;;  %v2199_v60 = vld [vmem:[#allocation8 + $0x140] ss:$8 sps:$4 sm:$0xff]  }
  0x95   :  { %805 = vmatprep.subr.bf16.mxu0 %v2178_v61  ;;  %1609 = vmatpush1.bf16.msra.mxu1 %v2235_v4  ;;  %v2204_v61 = vld [vmem:[#allocation8 + $0x154] ss:$8 sps:$4 sm:$0xff]  }
  0x96   :  { %1610 = vmatprep.subr.bf16.mxu1 %v2243_v6  ;;  %v2205_v6 = vld [vmem:[#allocation8 + $0x160] ss:$8 sps:$4 sm:$0xff]  }
  0x98   :  { %806 = vmatpush1.bf16.msra.mxu0 %v2180_v62  ;;  %v137_v62 = vrot.slane %v2677_v32, %v136_v59 }
  0x99   :  { %807 = vmatprep.subr.bf16.mxu0 %v2181_v63  ;;  %1611 = vmatpush1.bf16.msra.mxu1 %v2241_v7  ;;  %v2202_v63 = vld [vmem:[#allocation8 + $0x150] ss:$8 sps:$4 sm:$0xff]  }
  0x9a   :  { %1612 = vmatprep.subr.bf16.mxu1 %v2249_v8  ;;  %v2210_v8 = vld [vmem:[#allocation8 + $0x174] ss:$8 sps:$4 sm:$0xff]  }
  0x9c   :  { %808 = vmatpush1.bf16.msra.mxu0 %v2183_v0 }
  0x9d   :  { %809 = vmatprep.subr.bf16.mxu0 %v2184_v1  ;;  %1613 = vmatpush1.bf16.msra.mxu1 %v2247_v9  ;;  %v2207_v1 = vld [vmem:[#allocation8 + $0x164] ss:$8 sps:$4 sm:$0xff]  }
  0x9e   :  { %1614 = vmatprep.subr.bf16.mxu1 %v2255_v10  ;;  %v2208_v10 = vld [vmem:[#allocation8 + $0x170] ss:$8 sps:$4 sm:$0xff]  }
  0xa0   :  { %810 = vmatpush1.bf16.msra.mxu0 %v2186_v2 }
  0xa1   :  { %820 = vmatprep.subr.bf16.mxu0 %v2189_v3  ;;  %1615 = vmatpush1.bf16.msra.mxu1 %v2253_v11 }
  0xa2   :  { %1616 = vmatprep.subr.bf16.mxu1 %v2261_v12  ;;  %v2213_v12 = vld [vmem:[#allocation8 + $0x184] ss:$8 sps:$4 sm:$0xff]  }
  0xa5   :  { %1617 = vmatpush1.bf16.msra.mxu1 %v2259_v13  ;;  %v2211_v13 = vld [vmem:[#allocation8 + $0x180] ss:$8 sps:$4 sm:$0xff]  }
  0xa6   :  { %1618 = vmatprep.subr.bf16.mxu1 %v2267_v14  ;;  %v2216_v14 = vld [vmem:[#allocation8 + $0x194] ss:$8 sps:$4 sm:$0xff]  }
  0xa9   :  { %1619 = vmatpush1.bf16.msra.mxu1 %v2265_v15  ;;  %v2214_v15 = vld [vmem:[#allocation8 + $0x190] ss:$8 sps:$4 sm:$0xff]  }
  0xaa   :  { %1620 = vmatprep.subr.bf16.mxu1 %v2273_v16  ;;  %v2219_v16 = vld [vmem:[#allocation8 + $0x1a4] ss:$8 sps:$4 sm:$0xff]  }
  0xad   :  { %1621 = vmatpush1.bf16.msra.mxu1 %v2271_v17  ;;  %v2217_v17 = vld [vmem:[#allocation8 + $0x1a0] ss:$8 sps:$4 sm:$0xff]  }
  0xae   :  { %1622 = vmatprep.subr.bf16.mxu1 %v2279_v18  ;;  %v2222_v18 = vld [vmem:[#allocation8 + $0x1b4] ss:$8 sps:$4 sm:$0xff]  }
  0xb1   :  { %1623 = vmatpush1.bf16.msra.mxu1 %v2277_v19  ;;  %v2220_v19 = vld [vmem:[#allocation8 + $0x1b0] ss:$8 sps:$4 sm:$0xff]  }
  0xb2   :  { %1624 = vmatprep.subr.bf16.mxu1 %v2285_v20  ;;  %v2225_v20 = vld [vmem:[#allocation8 + $0x1c4] ss:$8 sps:$4 sm:$0xff]  }
  0xb5   :  { %1625 = vmatpush1.bf16.msra.mxu1 %v2283_v21  ;;  %v132_v21 = vsub.s32 2, %v2672_v28 }
  0xb6   :  { %1626 = vmatprep.subr.bf16.mxu1 %v2291_v22  ;;  %v2223_v22 = vld [vmem:[#allocation8 + $0x1c0] ss:$8 sps:$4 sm:$0xff]  }
  0xb9   :  { %1627 = vmatpush1.bf16.msra.mxu1 %v2289_v23  ;;  %v133_v23 = vrot.slane %v2677_v32, %v132_v21  ;;  %v2246_v32 = vld [vmem:[#allocation10 + $0x4c] ss:$28 sps:$4 sm:$0xff]  }
  0xba   :  { %1628 = vmatprep.subr.bf16.mxu1 %v2297_v24  ;;  %v2228_v24 = vld [vmem:[#allocation8 + $0x1d4] ss:$8 sps:$4 sm:$0xff]  }
  0xbd   :  { %1629 = vmatpush1.bf16.msra.mxu1 %v2295_v26 }
  0xbe   :  { %1630 = vmatprep.subr.bf16.mxu1 %v2303_v27  ;;  %v2231_v27 = vld [vmem:[#allocation8 + $0x1e4] ss:$8 sps:$4 sm:$0xff]  }
  0xc1   :  { %1631 = vmatpush1.bf16.msra.mxu1 %v2301_v29  ;;  %v2229_v29 = vld [vmem:[#allocation8 + $0x1e0] ss:$8 sps:$4 sm:$0xff]  }
  0xc2   :  { %1632 = vmatprep.subr.bf16.mxu1 %v2309_v30 }
  0xc5   :  { %1633 = vmatpush1.bf16.msra.mxu1 %v2307_v34  ;;  %v2234_v34 = vld [vmem:[#allocation8 + $0x1f4] ss:$8 sps:$4 sm:$0xff]  }
  0xc6   :  { %1634 = vmatprep.subr.bf16.mxu1 %v2315_v35  ;;  %v2232_v35 = vld [vmem:[#allocation8 + $0x1f0] ss:$8 sps:$4 sm:$0xff]  }
  0xc9   :  { %1635 = vmatpush1.bf16.msra.mxu1 %v2313_v38  ;;  %v2238_v38 = vld [vmem:[#allocation10 + $0x10] ss:$28 sps:$4 sm:$0xff]  }
 0x14b   :  { %v323_v39 = vpop.f32.mrb[0].mxu1 }
 0x14c   :  { %v324_v40 = vadd.f32 %v323_v39, %v125_v36  ;;  %v325_v41 = vpop.f32.mrb[1].mxu1 }
 0x14d   :  { %v326_v42 = vadd.f32 %v325_v41, %v129_v37  ;;  %v327_v43 = vpop.f32.mrb[2].mxu1  ;;  %v2240_v37 = vld [vmem:[#allocation10 + $0x14] ss:$28 sps:$4 sm:$0xff]   ;;  %v2252_v41 = vld [vmem:[#allocation10 + $0x84] ss:$28 sps:$4 sm:$0xff]  }
 0x14e   :  { %v371_v44 = vmul.f32 0.2, %v324_v40  ;;  %v328_v45 = vpop.f32.mrb[3].mxu1  ;;  %v2258_v43 = vld [vmem:[#allocation10 + $0xbc] ss:$28 sps:$4 sm:$0xff]  }
 0x14f   :  { %v372_v46 = vmul.f32 0.2, %v326_v42  ;;  %v2264_v45 = vld [vmem:[#allocation10 + $0xf4] ss:$28 sps:$4 sm:$0xff]  }
 0x150   :  { %v375_v47 = vmax.f32 %v324_v40, %v371_v44  ;;  %v2244_v40 = vld [vmem:[#allocation10 + $0x48] ss:$28 sps:$4 sm:$0xff]   ;;  %v2256_v44 = vld [vmem:[#allocation10 + $0xb8] ss:$28 sps:$4 sm:$0xff]  }
 0x151   :  { %v376_v48 = vmax.f32 %v326_v42, %v372_v46  ;;  %v2250_v42 = vld [vmem:[#allocation10 + $0x80] ss:$28 sps:$4 sm:$0xff]   ;;  %v2262_v46 = vld [vmem:[#allocation10 + $0xf0] ss:$28 sps:$4 sm:$0xff]  }
 0x152   :  { %v379_v51 = vpack.c.bf16 %v375_v47, %v375_v47  ;;  %v2270_v47 = vld [vmem:[#allocation10 + $0x12c] ss:$28 sps:$4 sm:$0xff]  }
 0x153   :  { %v380_v49 = vpack.c.bf16 %v376_v48, %v376_v48  ;;  %v2268_v48 = vld [vmem:[#allocation10 + $0x128] ss:$28 sps:$4 sm:$0xff]  }
 0x155   :  { %811 = vmatprep.mubr.bf16.mxu0 %v380_v49  ;;  %v2276_v49 = vld [vmem:[#allocation10 + $0x164] ss:$28 sps:$4 sm:$0xff]  }
 0x156   :  { %812 = vmatmul.mubr.bf16.vlgmr.msra.gmra.mrb[0].mxu0 %v379_v51  ;;  %v2282_v51 = vld [vmem:[#allocation10 + $0x19c] ss:$28 sps:$4 sm:$0xff]  }
 0x157   :  { %821 = vmatpush1.bf16.msra.mxu0 %v2187_v50  ;;  %v2274_v50 = vld [vmem:[#allocation10 + $0x160] ss:$28 sps:$4 sm:$0xff]  }
 0x158   :  { %822 = vmatprep.subr.bf16.mxu0 %v2192_v52  ;;  %v2280_v52 = vld [vmem:[#allocation10 + $0x198] ss:$28 sps:$4 sm:$0xff]  }
 0x15b   :  { %823 = vmatpush1.bf16.msra.mxu0 %v2190_v53  ;;  %v2288_v53 = vld [vmem:[#allocation10 + $0x1d4] ss:$28 sps:$4 sm:$0xff]  }
 0x15c   :  { %824 = vmatprep.subr.bf16.mxu0 %v2195_v54  ;;  %v2286_v54 = vld [vmem:[#allocation10 + $0x1d0] ss:$28 sps:$4 sm:$0xff]  }
 0x15f   :  { %825 = vmatpush1.bf16.msra.mxu0 %v2193_v55  ;;  %v2294_v55 = vld [vmem:[#allocation10 + $0x20c] ss:$28 sps:$4 sm:$0xff]  }
 0x160   :  { %826 = vmatprep.subr.bf16.mxu0 %v2198_v56  ;;  %v2292_v56 = vld [vmem:[#allocation10 + $0x208] ss:$28 sps:$4 sm:$0xff]  }
 0x163   :  { %827 = vmatpush1.bf16.msra.mxu0 %v2196_v57  ;;  %v2300_v57 = vld [vmem:[#allocation10 + $0x244] ss:$28 sps:$4 sm:$0xff]  }
 0x164   :  { %828 = vmatprep.subr.bf16.mxu0 %v2201_v58  ;;  %v2298_v58 = vld [vmem:[#allocation10 + $0x240] ss:$28 sps:$4 sm:$0xff]  }
 0x167   :  { %829 = vmatpush1.bf16.msra.mxu0 %v2199_v60  ;;  %v364_v0 = vpop.f32.mrb[4].mxu1  ;;  %v2306_v60 = vld [vmem:[#allocation10 + $0x27c] ss:$28 sps:$4 sm:$0xff]  }
 0x168   :  { %830 = vmatprep.subr.bf16.mxu0 %v2204_v61  ;;  %v366_v2 = vpop.f32.mrb[5].mxu1  ;;  %v365_v26 = vadd.f32 %v364_v0, %v133_v23  ;;  %v2304_v61 = vld [vmem:[#allocation10 + $0x278] ss:$28 sps:$4 sm:$0xff]   ;;  %v2318_v0 = vld [vmem:[#allocation10 + $0x2ec] ss:$28 sps:$4 sm:$0xff]  }
 0x169   :  { %v367_v3 = vadd.f32 %v366_v2, %v137_v62  ;;  %v368_v4 = vpop.f32.mrb[6].mxu1  ;;  %v2312_v62 = vld [vmem:[#allocation10 + $0x2b4] ss:$28 sps:$4 sm:$0xff]  }
 0x16a   :  { %v369_v5 = vpop.f32.mrb[7].mxu1  ;;  %v373_v30 = vmul.f32 0.2, %v365_v26  ;;  %v2321_v2 = vld [vmem:[#allocation10 + $0x314] ss:$28 sps:$4 sm:$0xff]  }
 0x16b   :  { %831 = vmatpush1.bf16.msra.mxu0 %v2202_v63  ;;  %v374_v7 = vmul.f32 0.2, %v367_v3  ;;  %v2310_v63 = vld [vmem:[#allocation10 + $0x2b0] ss:$28 sps:$4 sm:$0xff]   ;;  %v2324_v4 = vld [vmem:[#allocation10 + $0x324] ss:$28 sps:$4 sm:$0xff]   ;;  %1636 = vmatprep.subr.bf16.mxu1 %v2321_v2 }
 0x16c   :  { %832 = vmatprep.subr.bf16.mxu0 %v2207_v1  ;;  %v377_v36 = vmax.f32 %v365_v26, %v373_v30  ;;  %v2316_v1 = vld [vmem:[#allocation10 + $0x2e8] ss:$28 sps:$4 sm:$0xff]   ;;  %v2322_v5 = vld [vmem:[#allocation10 + $0x320] ss:$28 sps:$4 sm:$0xff]  }
 0x16d   :  { %v378_v9 = vmax.f32 %v367_v3, %v374_v7  ;;  %v2319_v3 = vld [vmem:[#allocation10 + $0x310] ss:$28 sps:$4 sm:$0xff]   ;;  %v2325_v7 = vld [vmem:[#allocation10 + $0x348] ss:$28 sps:$4 sm:$0xff]   ;;  %v2334_v30 = vld [vmem:[#allocation10 + $0x40] ss:$28 sps:$4 sm:$0xff]  }
 0x16e   :  { %v381_v39 = vpack.c.bf16 %v377_v36, %v377_v36  ;;  %1637 = vmatpush1.bf16.msra.mxu1 %v2319_v3  ;;  %v2331_v26 = vld [vmem:[#allocation10 + $0x8] ss:$28 sps:$4 sm:$0xff]   ;;  %v2342_v36 = vld [vmem:[#allocation10 + $0xb4] ss:$28 sps:$4 sm:$0xff]  }
 0x16f   :  { %833 = vmatpush1.bf16.msra.mxu0 %v2205_v6  ;;  %v382_v11 = vpack.c.bf16 %v378_v9, %v378_v9  ;;  %v2327_v6 = vld [vmem:[#allocation10 + $0x34c] ss:$28 sps:$4 sm:$0xff]   ;;  %v2328_v9 = vld [vmem:[#allocation10 + $0x358] ss:$28 sps:$4 sm:$0xff]  }
 0x170   :  { %834 = vmatprep.subr.bf16.mxu0 %v2210_v8  ;;  %v2330_v8 = vld [vmem:[#allocation10 + $0x35c] ss:$28 sps:$4 sm:$0xff]   ;;  %1638 = vmatprep.subr.bf16.mxu1 %v2327_v6  ;;  %v2383_v2 = vld [vmem:[#allocation10 + $0x248] ss:$28 sps:$4 sm:$0xff]  }
 0x171   :  { %852 = vmatprep.mubr.bf16.mxu0 %v382_v11  ;;  %v447_v11 = vld [vmem:[%s2739_s4] sm:$0x3]  ;;  %v2387_v6 = vld [vmem:[#allocation10 + $0x2b8] ss:$28 sps:$4 sm:$0xff]  }
 0x172   :  { %1639 = vmatpush1.bf16.msra.mxu1 %v2325_v7  ;;  %v2384_v3 = vld [vmem:[#allocation10 + $0x88] ss:$28 sps:$4 sm:$0xff]   ;;  %v2388_v7 = vld [vmem:[#allocation10 + $0xf8] ss:$28 sps:$4 sm:$0xff]  }
 0x173   :  { %835 = vmatpush1.bf16.msra.mxu0 %v2208_v10  ;;  %v2333_v10 = vld [vmem:[#allocation10 + $0xc] ss:$28 sps:$4 sm:$0xff]  }
 0x174   :  { %836 = vmatprep.subr.bf16.mxu0 %v2213_v12  ;;  %1649 = vmatprep.subr.bf16.mxu1 %v2333_v10  ;;  %v452_v12 = vrot.slane %v447_v11, %v2675_v31  ;;  %v2391_v10 = vld [vmem:[#allocation10 + $0x328] ss:$28 sps:$4 sm:$0xff]  }
 0x177   :  { %837 = vmatpush1.bf16.msra.mxu0 %v2211_v13  ;;  %v456_v13 = vrot.slane %v447_v11, %v2680_v33  ;;  %v2392_v11 = vld [vmem:[#allocation10 + $0x168] ss:$28 sps:$4 sm:$0xff]  }
 0x178   :  { %838 = vmatprep.subr.bf16.mxu0 %v2216_v14 }
 0x17b   :  { %839 = vmatpush1.bf16.msra.mxu0 %v2214_v15 }
 0x17c   :  { %840 = vmatprep.subr.bf16.mxu0 %v2219_v16 }
 0x17f   :  { %841 = vmatpush1.bf16.msra.mxu0 %v2217_v17 }
 0x180   :  { %842 = vmatprep.subr.bf16.mxu0 %v2222_v18 }
 0x183   :  { %843 = vmatpush1.bf16.msra.mxu0 %v2220_v19 }
 0x184   :  { %844 = vmatprep.subr.bf16.mxu0 %v2225_v20 }
 0x187   :  { %845 = vmatpush1.bf16.msra.mxu0 %v2223_v22 }
 0x188   :  { %846 = vmatprep.subr.bf16.mxu0 %v2228_v24 }
 0x18b   :  { %847 = vmatpush1.bf16.msra.mxu0 %v2226_v25 }
 0x18c   :  { %848 = vmatprep.subr.bf16.mxu0 %v2231_v27 }
 0x18f   :  { %849 = vmatpush1.bf16.msra.mxu0 %v2229_v29  ;;  %v2336_v29 = vld [vmem:[#allocation10 + $0x44] ss:$28 sps:$4 sm:$0xff]  }
 0x190   :  { %850 = vmatprep.subr.bf16.mxu0 %v2234_v34  ;;  %v2339_v34 = vld [vmem:[#allocation10 + $0x7c] ss:$28 sps:$4 sm:$0xff]  }
 0x193   :  { %851 = vmatpush1.bf16.msra.mxu0 %v2232_v35  ;;  %v2337_v35 = vld [vmem:[#allocation10 + $0x78] ss:$28 sps:$4 sm:$0xff]  }
 0x194   :  { %1690 = vmatprep.subr.bf16.mxu0 %v2240_v37  ;;  %v2340_v37 = vld [vmem:[#allocation10 + $0xb0] ss:$28 sps:$4 sm:$0xff]  }
 0x196   :  { %853 = vmatmul.mubr.bf16.vlgmr.msra.gmra.mrb[0].mxu0 %v381_v39  ;;  %v2343_v39 = vld [vmem:[#allocation10 + $0xe8] ss:$28 sps:$4 sm:$0xff]  }
 0x197   :  { %1691 = vmatpush1.bf16.msra.mxu0 %v2238_v38  ;;  %v2345_v38 = vld [vmem:[#allocation10 + $0xec] ss:$28 sps:$4 sm:$0xff]  }
 0x198   :  { %1692 = vmatprep.subr.bf16.mxu0 %v2246_v32  ;;  %v2348_v32 = vld [vmem:[#allocation10 + $0x124] ss:$28 sps:$4 sm:$0xff]  }
 0x19b   :  { %1693 = vmatpush1.bf16.msra.mxu0 %v2244_v40  ;;  %v2346_v40 = vld [vmem:[#allocation10 + $0x120] ss:$28 sps:$4 sm:$0xff]  }
 0x19c   :  { %1694 = vmatprep.subr.bf16.mxu0 %v2252_v41  ;;  %v2351_v41 = vld [vmem:[#allocation10 + $0x15c] ss:$28 sps:$4 sm:$0xff]  }
 0x19f   :  { %1695 = vmatpush1.bf16.msra.mxu0 %v2250_v42  ;;  %v2349_v42 = vld [vmem:[#allocation10 + $0x158] ss:$28 sps:$4 sm:$0xff]  }
 0x1a0   :  { %1696 = vmatprep.subr.bf16.mxu0 %v2258_v43  ;;  %v2354_v43 = vld [vmem:[#allocation10 + $0x194] ss:$28 sps:$4 sm:$0xff]  }
 0x1a3   :  { %1697 = vmatpush1.bf16.msra.mxu0 %v2256_v44  ;;  %v2352_v44 = vld [vmem:[#allocation10 + $0x190] ss:$28 sps:$4 sm:$0xff]  }
 0x1a4   :  { %1698 = vmatprep.subr.bf16.mxu0 %v2264_v45  ;;  %v2357_v45 = vld [vmem:[#allocation10 + $0x1cc] ss:$28 sps:$4 sm:$0xff]  }
 0x1a7   :  { %1699 = vmatpush1.bf16.msra.mxu0 %v2262_v46  ;;  %v2355_v46 = vld [vmem:[#allocation10 + $0x1c8] ss:$28 sps:$4 sm:$0xff]  }
 0x1a8   :  { %1700 = vmatprep.subr.bf16.mxu0 %v2270_v47  ;;  %v2360_v47 = vld [vmem:[#allocation10 + $0x204] ss:$28 sps:$4 sm:$0xff]  }
 0x1ab   :  { %1701 = vmatpush1.bf16.msra.mxu0 %v2268_v48  ;;  %v2358_v48 = vld [vmem:[#allocation10 + $0x200] ss:$28 sps:$4 sm:$0xff]  }
 0x1ac   :  { %1702 = vmatprep.subr.bf16.mxu0 %v2276_v49  ;;  %v2363_v49 = vld [vmem:[#allocation10 + $0x23c] ss:$28 sps:$4 sm:$0xff]  }
 0x1af   :  { %1703 = vmatpush1.bf16.msra.mxu0 %v2274_v50  ;;  %v2361_v50 = vld [vmem:[#allocation10 + $0x238] ss:$28 sps:$4 sm:$0xff]  }
 0x1b0   :  { %1704 = vmatprep.subr.bf16.mxu0 %v2282_v51  ;;  %v2366_v51 = vld [vmem:[#allocation10 + $0x274] ss:$28 sps:$4 sm:$0xff]  }
 0x1b3   :  { %1705 = vmatpush1.bf16.msra.mxu0 %v2280_v52  ;;  %v2364_v52 = vld [vmem:[#allocation10 + $0x270] ss:$28 sps:$4 sm:$0xff]  }
 0x1b4   :  { %1706 = vmatprep.subr.bf16.mxu0 %v2288_v53  ;;  %v2369_v53 = vld [vmem:[#allocation10 + $0x2ac] ss:$28 sps:$4 sm:$0xff]  }
 0x1b7   :  { %1707 = vmatpush1.bf16.msra.mxu0 %v2286_v54  ;;  %v2367_v54 = vld [vmem:[#allocation10 + $0x2a8] ss:$28 sps:$4 sm:$0xff]  }
 0x1b8   :  { %1708 = vmatprep.subr.bf16.mxu0 %v2294_v55  ;;  %v2372_v55 = vld [vmem:[#allocation10 + $0x2e4] ss:$28 sps:$4 sm:$0xff]  }
 0x1bb   :  { %1709 = vmatpush1.bf16.msra.mxu0 %v2292_v56  ;;  %v2370_v56 = vld [vmem:[#allocation10 + $0x2e0] ss:$28 sps:$4 sm:$0xff]  }
 0x1bc   :  { %1710 = vmatprep.subr.bf16.mxu0 %v2300_v57  ;;  %v2375_v57 = vld [vmem:[#allocation10 + $0x31c] ss:$28 sps:$4 sm:$0xff]  }
 0x1bf   :  { %1711 = vmatpush1.bf16.msra.mxu0 %v2298_v58  ;;  %v2373_v58 = vld [vmem:[#allocation10 + $0x318] ss:$28 sps:$4 sm:$0xff]  }
 0x1c0   :  { %1712 = vmatprep.subr.bf16.mxu0 %v2306_v60  ;;  %v2378_v60 = vld [vmem:[#allocation10 + $0x354] ss:$28 sps:$4 sm:$0xff]  }
 0x1c3   :  { %1713 = vmatpush1.bf16.msra.mxu0 %v2304_v61  ;;  %v2376_v61 = vld [vmem:[#allocation10 + $0x350] ss:$28 sps:$4 sm:$0xff]  }
 0x1c4   :  { %1714 = vmatprep.subr.bf16.mxu0 %v2312_v62  ;;  %v2379_v62 = vld [vmem:[#allocation10 + $0x1d8] ss:$28 sps:$4 sm:$0xff]  }
 0x1c7   :  { %1715 = vmatpush1.bf16.msra.mxu0 %v2310_v63  ;;  %v2380_v63 = vld [vmem:[#allocation10 + $0x18] ss:$28 sps:$4 sm:$0xff]  }
 0x1c8   :  { %1716 = vmatprep.subr.bf16.mxu0 %v2318_v0  ;;  %v2381_v0 = vld [vmem:[#allocation10 + $0x210] ss:$28 sps:$4 sm:$0xff]  }
 0x1cb   :  { %1717 = vmatpush1.bf16.msra.mxu0 %v2316_v1  ;;  %v2382_v1 = vld [vmem:[#allocation10 + $0x50] ss:$28 sps:$4 sm:$0xff]  }
 0x1cc   :  { %1718 = vmatprep.subr.bf16.mxu0 %v2324_v4  ;;  %v2385_v4 = vld [vmem:[#allocation10 + $0x280] ss:$28 sps:$4 sm:$0xff]  }
 0x1cf   :  { %1719 = vmatpush1.bf16.msra.mxu0 %v2322_v5  ;;  %v2386_v5 = vld [vmem:[#allocation10 + $0xc0] ss:$28 sps:$4 sm:$0xff]  }
 0x1d0   :  { %1720 = vmatprep.subr.bf16.mxu0 %v2330_v8  ;;  %v2389_v8 = vld [vmem:[#allocation10 + $0x2f0] ss:$28 sps:$4 sm:$0xff]  }
 0x1d3   :  { %1721 = vmatpush1.bf16.msra.mxu0 %v2328_v9  ;;  %v2390_v9 = vld [vmem:[#allocation10 + $0x130] ss:$28 sps:$4 sm:$0xff]  }
 0x269   :  { %v854_v14 = vpop.f32.mrb[0].mxu0 }
 0x26a   :  { %v2080_v15 = vadd.f32 %v854_v14, %v452_v12  ;;  %v856_v16 = vpop.f32.mrb[1].mxu0  ;;  %v2393_v12 = vld [vmem:[#allocation10 + $0x360] ss:$28 sps:$4 sm:$0xff]   ;;  %v1015_v14 = vsub.s32 4, %v2672_v28 }
 0x26b   :  { %v2081_v17 = vadd.f32 %v856_v16, %v456_v13  ;;  %v858_v18 = vpop.f32.mrb[2].mxu0  ;;  %v2394_v13 = vld [vmem:[#allocation10 + $0x1a0] ss:$28 sps:$4 sm:$0xff]   ;;  %v1019_v16 = vsub.s32 5, %v2672_v28 }
 0x26c   :  { %v861_v19 = vmul.f32 0.2, %v2080_v15  ;;  %v859_v20 = vpop.f32.mrb[3].mxu0 }
 0x26d   :  { %v862_v22 = vmul.f32 0.2, %v2081_v17 }
 0x26e   :  { %v863_v23 = vmax.f32 %v2080_v15, %v861_v19  ;;  %v995_v15 = vld [vmem:[%s2741_s6] sm:$0xff]  ;;  %s2561_s6 = smov [#allocation11]  }
 0x26f   :  { %v864_v24 = vmax.f32 %v2081_v17, %v862_v22  ;;  %v1000_v17 = vrot.slane %v995_v15, %v2675_v31  ;;  %v1016_v18 = vrot.slane %v995_v15, %v1015_v14  ;;  %v1004_v19 = vrot.slane %v995_v15, %v2680_v33  ;;  %s1831_s17 = sshll.u32 %s2561_s6, 4  ;;  %s1832_s17 = int_to_ptr.vmem [resolvable:$true] %s1831_s17 }
 0x270   :  { %v2701_v27 = vpack.c.bf16 %v863_v23, %v863_v23  ;;  %v1020_v20 = vrot.slane %v995_v15, %v1019_v16  ;;  %s2519_s18 = scalar_lea.vmem %s1832_s17, 448  ;;  %p2524_p13 = scmp.lt.s32.totalorder %s1832_s17, %s1832_s17 }
 0x271   :  { %v2699_v25 = vpack.c.bf16 %v864_v24, %v864_v24  ;;  %p2520_p12 = scmp.ne.s32.totalorder %s1832_s17, %s2519_s18  ;;  %p2525_p0 = scmp.lt.s32.totalorder %s2519_s18, %s2519_s18 }
 0x273   :  { %1640 = vmatprep.mubr.bf16.mxu1 %v2699_v25  ;;  %1722 = vmatprep.mubr.bf16.mxu0 %v2699_v25  ;;  %p2526_p1 = por %p2525_p0, %p2524_p13 }
 0x274   :  { %1641 = vmatmul.mubr.bf16.vlgmr.msra.gmra.mrb[8].mxu1 %v2701_v27  ;;  %1723 = vmatmul.mubr.bf16.vlgmr.msra.gmra.mrb[4].mxu0 %v2701_v27 }
 0x275   :  { %1650 = vmatpush1.bf16.msra.mxu1 %v2331_v26  ;;  %1681 = vmatprep.mubr.bf16.mxu1 %v2699_v25  ;;  %p2527_p2 = pnand %p2526_p1, %p2520_p12 }
 0x276   :  { %1651 = vmatprep.subr.bf16.mxu1 %v2336_v29 }
 0x279   :  { %1652 = vmatpush1.bf16.msra.mxu1 %v2334_v30 }
 0x27a   :  { %1653 = vmatprep.subr.bf16.mxu1 %v2339_v34 }
 0x27d   :  { %1654 = vmatpush1.bf16.msra.mxu1 %v2337_v35 }
 0x27e   :  { %1655 = vmatprep.subr.bf16.mxu1 %v2342_v36 }
 0x281   :  { %1656 = vmatpush1.bf16.msra.mxu1 %v2340_v37 }
 0x282   :  { %1657 = vmatprep.subr.bf16.mxu1 %v2345_v38 }
 0x285   :  { %1658 = vmatpush1.bf16.msra.mxu1 %v2343_v39 }
 0x286   :  { %1659 = vmatprep.subr.bf16.mxu1 %v2348_v32 }
 0x289   :  { %1660 = vmatpush1.bf16.msra.mxu1 %v2346_v40 }
 0x28a   :  { %1661 = vmatprep.subr.bf16.mxu1 %v2351_v41 }
 0x28d   :  { %1662 = vmatpush1.bf16.msra.mxu1 %v2349_v42 }
 0x28e   :  { %1663 = vmatprep.subr.bf16.mxu1 %v2354_v43 }
 0x291   :  { %1664 = vmatpush1.bf16.msra.mxu1 %v2352_v44 }
 0x292   :  { %1665 = vmatprep.subr.bf16.mxu1 %v2357_v45 }
 0x295   :  { %1666 = vmatpush1.bf16.msra.mxu1 %v2355_v46 }
 0x296   :  { %1667 = vmatprep.subr.bf16.mxu1 %v2360_v47 }
 0x299   :  { %1668 = vmatpush1.bf16.msra.mxu1 %v2358_v48 }
 0x29a   :  { %1669 = vmatprep.subr.bf16.mxu1 %v2363_v49  ;;  %v1008_v49 = vrot.slane %v995_v15, %v132_v21  ;;  %v1023_v21 = vsub.s32 6, %v2672_v28 }
 0x29d   :  { %1670 = vmatpush1.bf16.msra.mxu1 %v2361_v50  ;;  %v1012_v50 = vrot.slane %v995_v15, %v136_v59  ;;  %v1024_v59 = vrot.slane %v995_v15, %v1023_v21 }
 0x29e   :  { %1671 = vmatprep.subr.bf16.mxu1 %v2366_v51 }
 0x2a1   :  { %1672 = vmatpush1.bf16.msra.mxu1 %v2364_v52 }
 0x2a2   :  { %1673 = vmatprep.subr.bf16.mxu1 %v2369_v53 }
 0x2a5   :  { %1674 = vmatpush1.bf16.msra.mxu1 %v2367_v54 }
 0x2a6   :  { %1675 = vmatprep.subr.bf16.mxu1 %v2372_v55 }
 0x2a9   :  { %1676 = vmatpush1.bf16.msra.mxu1 %v2370_v56 }
 0x2aa   :  { %1677 = vmatprep.subr.bf16.mxu1 %v2375_v57 }
 0x2ad   :  { %1678 = vmatpush1.bf16.msra.mxu1 %v2373_v58 }
 0x2ae   :  { %1679 = vmatprep.subr.bf16.mxu1 %v2378_v60 }
 0x2b1   :  { %1680 = vmatpush1.bf16.msra.mxu1 %v2376_v61 }
 0x2b2   :  { %2058 = vmatprep.subr.bf16.mxu1 %v2379_v62 }
 0x2b4   :  { %1682 = vmatmul.mubr.bf16.vlgmr.msra.gmra.mrb[12].mxu1 %v2701_v27 }
 0x2b5   :  { %2059 = vmatpush3.bf16.msra.mxu1 %v2380_v63  ;;  %1763 = vmatprep.mubr.bf16.mxu1 %v2699_v25 }
 0x2b6   :  { %2060 = vmatprep.subr.bf16.mxu1 %v2381_v0 }
 0x2b9   :  { %2061 = vmatpush3.bf16.msra.mxu1 %v2382_v1 }
 0x2ba   :  { %2062 = vmatprep.subr.bf16.mxu1 %v2383_v2 }
 0x2bd   :  { %2063 = vmatpush3.bf16.msra.mxu1 %v2384_v3 }
 0x2be   :  { %2064 = vmatprep.subr.bf16.mxu1 %v2385_v4 }
 0x2c1   :  { %2065 = vmatpush3.bf16.msra.mxu1 %v2386_v5 }
 0x2c2   :  { %2066 = vmatprep.subr.bf16.mxu1 %v2387_v6 }
 0x2c5   :  { %2067 = vmatpush3.bf16.msra.mxu1 %v2388_v7 }
 0x2c6   :  { %2068 = vmatprep.subr.bf16.mxu1 %v2389_v8 }
 0x2c9   :  { %2069 = vmatpush3.bf16.msra.mxu1 %v2390_v9 }
 0x2ca   :  { %2070 = vmatprep.subr.bf16.mxu1 %v2391_v10 }
 0x2cd   :  { %2071 = vmatpush3.bf16.msra.mxu1 %v2392_v11 }
 0x2ce   :  { %2072 = vmatprep.subr.bf16.mxu1 %v2393_v12 }
 0x2d1   :  { %2073 = vmatpush3.bf16.msra.mxu1 %v2394_v13 }
 0x2d4   :  { %1764 = vmatmul.mubr.bf16.vlgmr.msra.gmra.mrb[16].mxu1 %v2701_v27 }
 0x347   :  { %v1642_v22 = vpop.f32.mrb[8].mxu1  ;;  %v1724_v23 = vpop.f32.mrb[4].mxu0 }
 0x348   :  { %v1643_v24 = vadd.f32 %v1642_v22, %v1000_v17  ;;  %v1725_v25 = vadd.f32 %v1724_v23, %v1016_v18  ;;  %v1644_v26 = vpop.f32.mrb[9].mxu1  ;;  %v1726_v27 = vpop.f32.mrb[5].mxu0 }
 0x349   :  { %v1645_v29 = vadd.f32 %v1644_v26, %v1004_v19  ;;  %v1727_v30 = vadd.f32 %v1726_v27, %v1020_v20  ;;  %v1646_v34 = vpop.f32.mrb[10].mxu1  ;;  %v1728_v35 = vpop.f32.mrb[6].mxu0 }
 0x34a   :  { %v1771_v36 = vmul.f32 0.2, %v1643_v24  ;;  %v1775_v37 = vmul.f32 0.2, %v1725_v25  ;;  %v1647_v38 = vpop.f32.mrb[11].mxu1  ;;  %v1729_v39 = vpop.f32.mrb[7].mxu0 }
 0x34b   :  { %v1772_v32 = vmul.f32 0.2, %v1645_v29  ;;  %v1776_v31 = vmul.f32 0.2, %v1727_v30 }
 0x34c   :  { %v1778_v40 = vmax.f32 %v1643_v24, %v1771_v36  ;;  %v1782_v41 = vmax.f32 %v1725_v25, %v1775_v37 }
 0x34d   :  { %v1779_v33 = vmax.f32 %v1645_v29, %v1772_v32  ;;  %v1783_v42 = vmax.f32 %v1727_v30, %v1776_v31 }
 0x34e   :  { %2395 = vtanh.f32 %v1778_v40 }
 0x34f   :  { %2397 = vtanh.f32 %v1782_v41 }
 0x350   :  { %2399 = vtanh.f32 %v1779_v33 }
 0x351   :  { %2401 = vtanh.f32 %v1783_v42 }
 0x358   :  { %v2396_v43 = vpop.eup %2395 }
 0x359   :  { %v2398_v44 = vpop.eup %2397 }
 0x35a   :  { %v2400_v45 = vpop.eup %2399 }
 0x35b   :  { %v2402_v46 = vpop.eup %2401  ;;  %v2054_v47 = vpack.c.bf16 %v2400_v45, %v2396_v43 }
 0x35c   :  { %v2056_v48 = vpack.c.bf16 %v2402_v46, %v2398_v44 }
 0x35d   :  { %1821 = vst [vmem:[#allocation11] sm:$0xff] %v2054_v47 }
 0x35e   :  { %1823 = vst [vmem:[#allocation11 + $0x10] sm:$0xff] %v2056_v48 }
 0x387   :  { %v1683_v51 = vpop.f32.mrb[12].mxu1 }
 0x388   :  { %v1684_v52 = vadd.f32 %v1683_v51, %v1008_v49  ;;  %v1685_v53 = vpop.f32.mrb[13].mxu1 }
 0x389   :  { %v1686_v54 = vadd.f32 %v1685_v53, %v1012_v50  ;;  %v1687_v55 = vpop.f32.mrb[14].mxu1 }
 0x38a   :  { %v1773_v56 = vmul.f32 0.2, %v1684_v52  ;;  %v1688_v57 = vpop.f32.mrb[15].mxu1 }
 0x38b   :  { %v1774_v58 = vmul.f32 0.2, %v1686_v54 }
 0x38c   :  { %v1780_v60 = vmax.f32 %v1684_v52, %v1773_v56 }
 0x38d   :  { %v1781_v61 = vmax.f32 %v1686_v54, %v1774_v58 }
 0x38e   :  { %2403 = vtanh.f32 %v1780_v60 }
 0x38f   :  { %2405 = vtanh.f32 %v1781_v61 }
 0x398   :  { %v2404_v62 = vpop.eup %2403 }
 0x399   :  { %v2406_v63 = vpop.eup %2405 }
 0x39a   :  { %v2055_v0 = vpack.c.bf16 %v2406_v63, %v2404_v62 }
 0x39c   :  { %1822 = vst [vmem:[#allocation11 + $0x8] sm:$0xff] %v2055_v0 }
 0x3a7   :  { %v2074_v1 = vpop.f32.mrb[16].mxu1 }
 0x3a8   :  { %v2075_v2 = vpop.f32.mrb[17].mxu1 }
 0x3a9   :  { %v2076_v3 = vadd.f32 %v2075_v2, %v2074_v1  ;;  %v2077_v4 = vpop.f32.mrb[18].mxu1 }
 0x3aa   :  { %v2078_v5 = vpop.f32.mrb[19].mxu1 }
 0x3ab   :  { %v1766_v6 = vadd.f32 %v2076_v3, %v1024_v59 }
 0x3ad   :  { %v1777_v7 = vmul.f32 0.2, %v1766_v6 }
 0x3af   :  { %v1784_v8 = vmax.f32 %v1766_v6, %v1777_v7 }
 0x3b1   :  { %2407 = vtanh.f32 %v1784_v8 }
 0x3bb   :  { %v2408_v9 = vpop.eup %2407 }
 0x3bc   :  { %v2057_v10 = vpack.c.bf16 %v2408_v9, %v2408_v9 }
 0x3be   :  { %1824 = vst [vmem:[#allocation11 + $0x18] sm:$0xf] %v2057_v10 }
 0x3bf   :  { %2530 = shalt.err (!%p2527_p2)
}
 0x3c0   :  { %s2531_s21 = scalar_lea.hbm %s2742_s7, 448 }
 0x3c1   :  { %p2532_p3 = scmp.ne.s32.totalorder %s2742_s7, %s2531_s21  ;;  %p2535_p4 = scmp.lt.u32.totalorder %s2531_s21, %s2742_s7 }
 0x3c3   :  { %p2537_p5 = pnand %p2535_p4, %p2532_p3 }
 0x3c5   :  { %2540 = shalt.err (!%p2537_p5)
}
 0x3c6   :  { %1834 = dma.vmem_to_hbm [thread:$0]  %s1832_s17, 448, %s2742_s7, [#allocation4]  }
 0x3c7   :  { %2547 = dma.done.wait [#allocation4], 448  }
 0x3c8   :  { %2548 = vsyncadd [#allocation4], 4294966848 }
 0x3c9   :  { %1838 = vsyncpa [#allocation3], 1 }
 0x3ca   :  { %1839 = vsyncpa [#allocation6], 1 }
 0x3cb   :  { %1840 = vsyncpa [#allocation9], 1 }
 0x3cc   :  { %1841 = vsyncpa [#allocation4], 1 }

</bundles_post_ra>
